<compile_context>
chip_gen: v7x
topology: tpu7x:2x2x1
jax: 0.10.0
libtpu: 0.0.40
codegen_flags: <defaults>
</compile_context>

<pallas_src>
import itertools

import jax
import jax.numpy as jnp
import numpy as np
from jax.experimental import pallas as pl
from jax.experimental.pallas import tpu as pltpu

LANES = 128


def _round_up(x, m):
    return ((x + m - 1) // m) * m


def _bvq_kernel(x_ref, w_ref, q_ref, idx_ref, sse_ref):
    x = x_ref[...].astype(jnp.float32)                  # (T, 128) lane-dense
    # Nearest binary code per dimension == threshold at 0.5.  Strict '>' gives
    # bit 0 at an exact tie, matching torch.argmin first-occurrence order.
    bits = (x > 0.5).astype(jnp.float32)
    q_ref[...] = bits.astype(q_ref.dtype)

    # Pack each group of L adjacent lanes (one latent vector, MSB first) into
    # its codebook index with a single block-diagonal matmul -> (T, 128/L).
    idx_f = jnp.dot(bits, w_ref[...], preferred_element_type=jnp.float32)
    idx_ref[...] = idx_f.astype(jnp.int32)

    # Per-lane partial SSE for the commitment loss; reduced outside the kernel
    # (per-tile partials keep the grid axis "parallel" and improve precision).
    d = bits - x
    sse_ref[...] = jnp.sum(d * d, axis=0, keepdims=True).reshape(sse_ref.shape)


def binary_vector_quantize(inputs, num_latents, *, tile_rows=2048):
    """Forward pass of BinaryVectorQuantizer.

    Returns (quantized_st, commitment_loss, encoding_indices), matching the
    torch module's forward values.
    """
    L = int(num_latents)
    if LANES % L != 0:
        raise ValueError("num_latents must divide 128 for the lane-dense kernel")
    vecs_per_row = LANES // L

    orig_shape = inputs.shape
    x1d = inputs.reshape(-1)
    M = x1d.shape[0]                      # total elements = N * L
    if M % L != 0:
        raise ValueError("total number of elements must be divisible by num_latents")
    N = M // L

    rows = pl.cdiv(M, LANES)
    tr = min(int(tile_rows), _round_up(max(rows, 1), 8))
    n_steps = pl.cdiv(rows, tr)
    rows_pad = n_steps * tr
    m_pad = rows_pad * LANES
    if m_pad != M:
        # Only the ragged remainder is padded; zero padding is exact
        # (threshold(0)=0 -> quant==input==0 -> contributes 0 to the SSE).
        x1d = jnp.pad(x1d, (0, m_pad - M))
    x2d = x1d.reshape(rows_pad, LANES)

    # Block-diagonal bit-packing weights: W[p, p//L] = 2^(L-1 - p%L),
    # MSB-first to match itertools.product([0,1], repeat=L) codebook order.
    w_np = np.zeros((LANES, vecs_per_row), dtype=np.float32)
    for p in range(LANES):
        w_np[p, p // L] = float(2 ** (L - 1 - (p % L)))
    w = jnp.asarray(w_np)

    q2d, idx2d, sse_part = pl.pallas_call(
        _bvq_kernel,
        grid=(n_steps,),
        in_specs=[
            pl.BlockSpec((tr, LANES), lambda i: (i, 0)),            # inputs
            pl.BlockSpec((LANES, vecs_per_row), lambda i: (0, 0)),  # bit-pack W
        ],
        out_specs=[
            pl.BlockSpec((tr, LANES), lambda i: (i, 0)),            # quantized
            pl.BlockSpec((tr, vecs_per_row), lambda i: (i, 0)),     # indices
            pl.BlockSpec((1, 1, LANES), lambda i: (i, 0, 0)),       # SSE partials
        ],
        out_shape=(
            jax.ShapeDtypeStruct((rows_pad, LANES), inputs.dtype),
            jax.ShapeDtypeStruct((rows_pad, vecs_per_row), jnp.int32),
            jax.ShapeDtypeStruct((n_steps, 1, LANES), jnp.float32),
        ),
        compiler_params=pltpu.CompilerParams(
            dimension_semantics=("parallel",)),
    )(x2d, w)

    quantized_st = q2d.reshape(-1)[:M].reshape(orig_shape)
    encoding_indices = idx2d.reshape(-1)[:N]
    commitment_loss = jnp.sum(sse_part) / jnp.float32(M)
    return quantized_st, commitment_loss, encoding_indices


def make_codebook(num_latents: int) -> np.ndarray:
    """All 2^L binary combinations in itertools.product([0,1], repeat=L) order."""
    combos = list(itertools.product([0, 1], repeat=num_latents))
    return np.array(combos, dtype=np.float32)


if __name__ == "__main__":
    num_latents = 4                      # codebook: (16, 4)

    key = jax.random.PRNGKey(0)
    # NCHW input; total elements divisible by num_latents.
    inputs = jax.random.normal(key, (2, 4, 16, 16), dtype=jnp.float32)

    fn = jax.jit(binary_vector_quantize, static_argnums=1)
    quantized_st, commitment_loss, encoding_indices = fn(inputs, num_latents)
    jax.block_until_ready((quantized_st, commitment_loss, encoding_indices))

    # Pure-numpy reference check (mirrors the torch forward).
    cb_np = make_codebook(num_latents)
    flat_np = np.asarray(inputs).reshape(-1, num_latents)
    d = np.linalg.norm(flat_np[:, None, :] - cb_np[None, :, :], axis=-1)
    ref_idx = np.argmin(d, axis=1)
    ref_q = cb_np[ref_idx]
    ref_loss = np.mean((ref_q - flat_np) ** 2)

    assert np.array_equal(np.asarray(encoding_indices), ref_idx)
    assert np.allclose(np.asarray(quantized_st).reshape(-1, num_latents),
                       ref_q, atol=1e-6)
    assert np.allclose(float(commitment_loss), ref_loss, rtol=1e-5, atol=1e-6)

    print("KERNEL_OK")
</pallas_src>

<mosaic_0001>
module attributes {stable_mosaic.version = 11 : i64} {
  func.func @_bvq_kernel(%arg0: i32, %arg1: memref<16x128xf32, #tpu.memory_space<vmem>>, %arg2: memref<128x32xf32, #tpu.memory_space<vmem>>, %arg3: memref<16x128xf32, #tpu.memory_space<vmem>>, %arg4: memref<16x32xi32, #tpu.memory_space<vmem>>, %arg5: memref<1x1x128xf32, #tpu.memory_space<vmem>>) attributes {dimension_semantics = [#tpu.dimension_semantics<parallel>], iteration_bounds = array<i64: 1>, scalar_prefetch = 0 : i64, scratch_operands = 0 : i64, tpu.core_type = #tpu.core_type<tc>, window_params = [{transform_indices = @transform_0, window_bounds = array<i64: 16, 128>}, {pipeline_mode = #tpu.pipeline_mode<synchronous>, transform_indices = @transform_1, window_bounds = array<i64: 128, 32>}, {transform_indices = @transform_2, window_bounds = array<i64: 16, 128>}, {transform_indices = @transform_3, window_bounds = array<i64: 16, 32>}, {transform_indices = @transform_4, window_bounds = array<i64: 1, 1, 128>}]} {
    %c0 = arith.constant 0 : index
    %c0_0 = arith.constant 0 : index
    %0 = vector.load %arg1[%c0, %c0_0] : memref<16x128xf32, #tpu.memory_space<vmem>>, vector<16x128xf32>
    %cst = arith.constant 5.000000e-01 : f32
    %1 = vector.broadcast %cst : f32 to vector<16x128xf32>
    %2 = arith.cmpf ogt, %0, %1 : vector<16x128xf32>
    %3 = arith.extui %2 : vector<16x128xi1> to vector<16x128xi32>
    %4 = arith.sitofp %3 : vector<16x128xi32> to vector<16x128xf32>
    %c0_1 = arith.constant 0 : index
    %c0_2 = arith.constant 0 : index
    %5 = vector.load %arg3[%c0_1, %c0_2] : memref<16x128xf32, #tpu.memory_space<vmem>>, vector<16x128xf32>
    tpu.vector_store %arg3[%c0_1, %c0_2], %4 {strides = array<i32>} : memref<16x128xf32, #tpu.memory_space<vmem>>, vector<16x128xf32>,
    %c0_3 = arith.constant 0 : index
    %c0_4 = arith.constant 0 : index
    %6 = vector.load %arg2[%c0_3, %c0_4] : memref<128x32xf32, #tpu.memory_space<vmem>>, vector<128x32xf32>
    %cst_5 = arith.constant dense<0.000000e+00> : vector<16x32xf32>
    %7 = tpu.matmul %4, %6, %cst_5 {dimension_numbers = #tpu.dot_dimension_numbers<[1], [0], [0], [1], [0, 0, 1, 1], [], []>} : vector<16x128xf32>, vector<128x32xf32>, vector<16x32xf32> -> vector<16x32xf32>
    %8 = arith.fptosi %7 : vector<16x32xf32> to vector<16x32xi32>
    %c0_6 = arith.constant 0 : index
    %c0_7 = arith.constant 0 : index
    %9 = vector.load %arg4[%c0_6, %c0_7] : memref<16x32xi32, #tpu.memory_space<vmem>>, vector<16x32xi32>
    tpu.vector_store %arg4[%c0_6, %c0_7], %8 {strides = array<i32>} : memref<16x32xi32, #tpu.memory_space<vmem>>, vector<16x32xi32>,
    %10 = arith.subf %4, %0 : vector<16x128xf32>
    %11 = arith.mulf %10, %10 : vector<16x128xf32>
    %cst_8 = arith.constant dense<0.000000e+00> : vector<128xf32>
    %12 = vector.multi_reduction <add>, %11, %cst_8 [0] : vector<16x128xf32> to vector<128xf32>
    %13 = vector.shape_cast %12 : vector<128xf32> to vector<1x128xf32>
    %14 = vector.shape_cast %13 : vector<1x128xf32> to vector<1x1x128xf32>
    %c0_9 = arith.constant 0 : index
    %c0_10 = arith.constant 0 : index
    %c0_11 = arith.constant 0 : index
    %15 = vector.load %arg5[%c0_9, %c0_10, %c0_11] : memref<1x1x128xf32, #tpu.memory_space<vmem>>, vector<1x1x128xf32>
    tpu.vector_store %arg5[%c0_9, %c0_10, %c0_11], %14 {strides = array<i32>} : memref<1x1x128xf32, #tpu.memory_space<vmem>>, vector<1x1x128xf32>,
    return
  }
  func.func @transform_0(%arg0: i32) -> (i32, i32) {
    %c0_i32 = arith.constant 0 : i32
    %c0_i32_0 = arith.constant 0 : i32
    return %arg0, %c0_i32 : i32, i32
  }
  func.func @transform_1(%arg0: i32) -> (i32, i32) {
    %c0_i32 = arith.constant 0 : i32
    %c0_i32_0 = arith.constant 0 : i32
    %c0_i32_1 = arith.constant 0 : i32
    return %c0_i32, %c0_i32_0 : i32, i32
  }
  func.func @transform_2(%arg0: i32) -> (i32, i32) {
    %c0_i32 = arith.constant 0 : i32
    %c0_i32_0 = arith.constant 0 : i32
    return %arg0, %c0_i32 : i32, i32
  }
  func.func @transform_3(%arg0: i32) -> (i32, i32) {
    %c0_i32 = arith.constant 0 : i32
    %c0_i32_0 = arith.constant 0 : i32
    return %arg0, %c0_i32 : i32, i32
  }
  func.func @transform_4(%arg0: i32) -> (i32, i32, i32) {
    %c0_i32 = arith.constant 0 : i32
    %c0_i32_0 = arith.constant 0 : i32
    %c0_i32_1 = arith.constant 0 : i32
    return %arg0, %c0_i32, %c0_i32_0 : i32, i32, i32
  }
}

</mosaic_0001>

<bundles_post_ra>
// kernel: binary_vector_quantize.1
= control target key start
LH: loop header
LB: loop body
LE: loop exit
PB: predicated region body
PF: predicated region fallthrough
CT: control target
= control target key end

     0   :  { %v239_v13 = vmov 0.0   ;;  %v240_v16 = vmov 1.0   ;;  %vm117_vm2 = vcmask 261120   ;;  %s337_s1 = inlined_call_operand.vmem [shape: f32[128,32], index: 1, kind: input, shape index: {}]   ;;  %s338_s0 = inlined_call_operand.vmem [shape: f32[16,128], index: 0, kind: input, shape index: {}]   ;;  %s339_s2 = inlined_call_operand.vmem [shape: f32[16,128], index: 2, kind: output, shape index: {0}]   ;;  %s340_s4 = inlined_call_operand.vmem [shape: f32[1,1,128], index: 4, kind: output, shape index: {2}]   ;;  %s341_s3 = inlined_call_operand.vmem [shape: s32[16,32], index: 3, kind: output, shape index: {1}]  }
   0x1   :  { %v24_v0 = vld [vmem:[%s337_s1] sm:$0xff]  ;;  %v25_v1 = vld [vmem:[%s337_s1 + $0x8] sm:$0xff]  ;;  %v26_v2 = vld [vmem:[%s337_s1 + $0x10] sm:$0xff] }
   0x2   :  { %v201_v3 = vpack.c.bf16 %v25_v1, %v24_v0  ;;  %v27_v4 = vld [vmem:[%s337_s1 + $0x18] sm:$0xff]  ;;  %v28_v6 = vld [vmem:[%s337_s1 + $0x20] sm:$0xff]  ;;  %v29_v7 = vld [vmem:[%s337_s1 + $0x28] sm:$0xff] }
   0x3   :  { %v205_v5 = vpack.c.bf16 %v27_v4, %v26_v2  ;;  %v209_v8 = vpack.c.bf16 %v29_v7, %v28_v6  ;;  %v14_v9 = vld [vmem:[%s338_s0] sm:$0xff]  ;;  %v15_v10 = vld [vmem:[%s338_s0 + $0x8] sm:$0xff]  ;;  %v30_v11 = vld [vmem:[%s337_s1 + $0x30] sm:$0xff] }
   0x4   :  { %202 = vmatprep.subr.bf16.mxu0 %v201_v3  ;;  %v31_v12 = vld [vmem:[%s337_s1 + $0x38] sm:$0xff]  ;;  %vm16_vm0 = vcmp.gt.f32.partialorder %v14_v9, 0.5  ;;  %vm17_vm1 = vcmp.gt.f32.partialorder %v15_v10, 0.5  ;;  %v32_v20 = vld [vmem:[%s337_s1 + $0x40] sm:$0xff]  ;;  %v33_v21 = vld [vmem:[%s337_s1 + $0x48] sm:$0xff] }
   0x5   :  { %204 = vmatpush3.bf16.msra.mxu0 %v201_v3  ;;  %v144_v14 = vsel %vm16_vm0, 1.0, %v239_v13  ;;  %v145_v15 = vsel %vm17_vm1, 1.0, %v239_v13  ;;  %198 = vmatprep.mubr.msk.f32.mxu0 %vm16_vm0, %v240_v16  ;;  %v213_v19 = vpack.c.bf16 %v31_v12, %v30_v11  ;;  %v217_v25 = vpack.c.bf16 %v33_v21, %v32_v20  ;;  %v34_v26 = vld [vmem:[%s337_s1 + $0x50] sm:$0xff]  ;;  %v35_v27 = vld [vmem:[%s337_s1 + $0x58] sm:$0xff]  ;;  %v36_v31 = vld [vmem:[%s337_s1 + $0x60] sm:$0xff] }
   0x6   :  { %206 = vmatprep.subr.bf16.mxu0 %v205_v5  ;;  %22 = vst [vmem:[%s339_s2] sm:$0xff] %v144_v14  ;;  %23 = vst [vmem:[%s339_s2 + $0x8] sm:$0xff] %v145_v15  ;;  %v120_v17 = vsub.f32 %v144_v14, %v14_v9  ;;  %v121_v18 = vsub.f32 %v145_v15, %v15_v10  ;;  %v221_v30 = vpack.c.bf16 %v35_v27, %v34_v26  ;;  %v37_v32 = vld [vmem:[%s337_s1 + $0x68] sm:$0xff]  ;;  %v38_v36 = vld [vmem:[%s337_s1 + $0x70] sm:$0xff] }
   0x7   :  { %v225_v35 = vpack.c.bf16 %v37_v32, %v36_v31  ;;  %v39_v37 = vld [vmem:[%s337_s1 + $0x78] sm:$0xff] }
   0x8   :  { %v122_v22 = vmul.f32 %v120_v17, %v120_v17  ;;  %v123_v23 = vmul.f32 %v121_v18, %v121_v18  ;;  %v229_v40 = vpack.c.bf16 %v39_v37, %v38_v36 }
   0x9   :  { %208 = vmatpush3.bf16.msra.mxu0 %v205_v5 }
   0xa   :  { %210 = vmatprep.subr.bf16.mxu0 %v209_v8  ;;  %v124_v24 = vadd.f32 %v123_v23, %v122_v22 }
   0xc   :  { %v125_v28 = vrot.slane %v124_v24, 4 }
   0xd   :  { %212 = vmatpush3.bf16.msra.mxu0 %v209_v8 }
   0xe   :  { %214 = vmatprep.subr.bf16.mxu0 %v213_v19  ;;  %v126_v29 = vadd.f32 %v125_v28, %v124_v24 }
  0x10   :  { %v127_v33 = vrot.slane %v126_v29, 2 }
  0x11   :  { %216 = vmatpush3.bf16.msra.mxu0 %v213_v19 }
  0x12   :  { %218 = vmatprep.subr.bf16.mxu0 %v217_v25  ;;  %v128_v34 = vadd.f32 %v127_v33, %v126_v29 }
  0x14   :  { %v129_v38 = vrot.slane %v128_v34, 1 }
  0x15   :  { %220 = vmatpush3.bf16.msra.mxu0 %v217_v25 }
  0x16   :  { %222 = vmatprep.subr.bf16.mxu0 %v221_v30  ;;  %v130_v39 = vadd.f32 %v129_v38, %v128_v34 }
  0x18   :  { %131 = vst [vmem:[%s340_s4] sm:$0x1] %v130_v39 }
  0x19   :  { %224 = vmatpush3.bf16.msra.mxu0 %v221_v30 }
  0x1a   :  { %226 = vmatprep.subr.bf16.mxu0 %v225_v35 }
  0x1d   :  { %228 = vmatpush3.bf16.msra.mxu0 %v225_v35 }
  0x1e   :  { %230 = vmatprep.subr.bf16.mxu0 %v229_v40 }
  0x21   :  { %232 = vmatpush3.bf16.msra.mxu0 %v229_v40 }
  0x24   :  { %199 = vmatmul.mubr.msk.f32.vlgmr.msra.gmra.mrb[0].mxu0 %vm17_vm1, %v240_v16 }
  0xf7   :  { %v200_v41 = vpop.f32.mrb[0].mxu0 }
  0xf8   :  { %v235_v42 = vtrunc.f32 %v200_v41  ;;  %v106_v43 = vpop.f32.mrb[1].mxu0 }
  0xf9   :  { %v233_v44 = vtrunc.f32 %v106_v43 }
  0xfa   :  { %v236_v45 = vcvt.f32.s32 %v235_v42 }
  0xfb   :  { %v234_v46 = vcvt.f32.s32 %v233_v44 }
  0xfc   :  { %119 = vst.msk [vmem:[%s341_s3 + $0x8] sm:$0xff] %vm117_vm2, %v236_v45 }
  0xfd   :  { %118 = vst.msk [vmem:[%s341_s3] sm:$0xff] %vm117_vm2, %v234_v46 }

</bundles_post_ra>
